<compile_context>
chip_gen: v5e
topology: v5e:2x2
jax: 0.10.0
libtpu: 0.0.40
codegen_flags: <defaults>
</compile_context>

<pallas_src>
import functools

import jax
import jax.numpy as jnp
from jax.experimental import pallas as pl
from jax.experimental.pallas import tpu as pltpu


def _msc_kernel(x_ref, h_ref, w_ref, ss_ref, o_ref, xpad_ref, *,
                n_branch, c_out, k_max, eps, approx_recip):
    # x_ref   : (1, C_in, tile_L)     main input tile (compute dtype)
    # h_ref   : (1, 1, C_in, 2p)      halo columns: [:p] left of tile, [p:] right of tile
    # w_ref   : (k_max, C_tot, C_in)  fused conv weights (shorter kernels zero-padded taps)
    # ss_ref  : (C_tot, 3)            col0 conv bias, col1 LN gamma, col2 LN beta (f32)
    # o_ref   : (1, C_tot, tile_L)    output tile, channels-first (PyTorch layout), L on lanes
    # xpad_ref: (C_in, tile_L + 2p)   staging buffer holding the haloed window
    p = (k_max - 1) // 2
    tile_l = o_ref.shape[2]

    # Stitch the haloed window once (single staging copy; NOT a k_max-deep im2col).
    xpad_ref[:, 0:p] = h_ref[0, 0, :, 0:p]
    xpad_ref[:, p:p + tile_l] = x_ref[0]
    xpad_ref[:, p + tile_l:] = h_ref[0, 0, :, p:]

    # Conv1d of all branches: k_max per-tap MXU matmuls, f32 accumulation in registers.
    acc = jnp.dot(w_ref[0], xpad_ref[:, 0:tile_l],
                  preferred_element_type=jnp.float32)
    for t in range(1, k_max):
        acc = acc + jnp.dot(w_ref[t], xpad_ref[:, t:t + tile_l],
                            preferred_element_type=jnp.float32)

    ss = ss_ref[...]                         # (C_tot, 3) f32
    acc = acc + ss[:, 0:1]                   # conv bias (per channel)

    inv_c = 1.0 / float(c_out)
    for g in range(n_branch):
        lo, hi = g * c_out, (g + 1) * c_out
        a = acc[lo:hi, :]                                       # (C_out, tile_L)
        # One-pass LayerNorm statistics over the channel (sublane) axis.
        mean = jnp.sum(a, axis=0, keepdims=True) * inv_c
        var = jnp.sum(a * a, axis=0, keepdims=True) * inv_c - mean * mean
        inv = jax.lax.rsqrt(var + eps)
        scale = inv * ss[lo:hi, 1:2]                            # fused LN affine
        y = a * scale + (ss[lo:hi, 2:3] - mean * scale)
        # Mish: y * tanh(softplus(y)); tanh(softplus(y)) = t(t+2)/(t(t+2)+2), t = e^y.
        # Single EUP exp; the clamp keeps e^y finite (ratio == 1.0f for y > ~20).
        t_ = jnp.exp(jnp.minimum(y, 20.0))
        num = t_ * (t_ + 2.0)
        den = num + 2.0
        if approx_recip:
            y = y * (num * pl.reciprocal(den, approx=True))
        else:
            y = y * (num / den)
        # Lane-dense store: L on lanes, sublane offset a multiple of C_out.
        o_ref[0, lo:hi, :] = y.astype(o_ref.dtype)


def multi_scale_cnn_block(x_ncl, params, kernel_sizes=(3, 5, 7), *,
                          tile_l=None, compute_dtype=None, approx_recip=True,
                          eps=1e-5):
    """Fused MultiScaleCNNBlock.  x_ncl: (B, C_in, L) -> (B, len(ks)*C_out, L)."""
    B, c_in, L = x_ncl.shape
    c_out = params[0]["w"].shape[0]
    n_branch = len(kernel_sizes)
    c_tot = n_branch * c_out
    k_max = max(kernel_sizes)
    p = (k_max - 1) // 2
    out_dtype = x_ncl.dtype
    cdt = jnp.dtype(compute_dtype) if compute_dtype is not None else jnp.dtype(x_ncl.dtype)
    itm_c = cdt.itemsize
    itm_o = jnp.dtype(out_dtype).itemsize

    # Per-step VMEM footprint (double-buffered tiles + resident weights + staging scratch).
    def vmem_est(tl):
        return (2 * c_in * tl * itm_c + 2 * c_in * 2 * p * itm_c
                + 2 * c_tot * tl * itm_o
                + 2 * k_max * c_tot * c_in * itm_c + 2 * c_tot * 3 * 4
                + c_in * (tl + 2 * p) * itm_c)

    # --- L tiling (lane axis): 512 lanes is ~HBM roofline while fitting v7x's
    #     64 MiB/TC VMEM budget; fall back to the full length for small L.
    auto_tile = tile_l is None
    if auto_tile:
        tile_l = L
        for cand in (512, 256, 128):
            if L % cand == 0:
                tile_l = cand
                break
        # TODO(synk): for long L not divisible by 128, pad L to a 128 multiple and mask
        # the ragged tail tile instead of taking one full-length tile.
    assert L % tile_l == 0, "tile_l must divide L"

    cp = {"dimension_semantics": ("parallel", "parallel")}
    est = vmem_est(tile_l)
    if est > (16 << 20):
        try:
            cap = int(pltpu.get_tpu_info().vmem_capacity_bytes)
        except Exception:
            cap = 64 << 20                       # v7x per-TensorCore VMEM
        budget = (3 * cap) // 4
        # Prefer shrinking tile_l over raising the scoped-VMEM limit (matters on v7x).
        while auto_tile and est > budget and tile_l % 256 == 0:
            tile_l //= 2
            est = vmem_est(tile_l)
        cp["vmem_limit_bytes"] = int(min(max(est + (est >> 2), 16 << 20), budget))
    n_l = L // tile_l

    # --- fused conv weights: zero-pad shorter kernels into the k_max-tap window,
    #     concatenate along C_out; stored (k_max, C_tot, C_in) so each tap is a clean
    #     leading-axis slab inside the kernel (weights are tiny; constant index_map
    #     keeps them resident across the grid).
    w_taps = []
    for k, prm in zip(kernel_sizes, params):
        off = (k_max - k) // 2
        w_taps.append(jnp.pad(prm["w"], ((0, 0), (0, 0), (off, k_max - k - off))))
    w_fused = jnp.transpose(jnp.concatenate(w_taps, axis=0), (2, 0, 1)).astype(cdt)

    scale_shift = jnp.stack(
        [jnp.concatenate([prm["b"] for prm in params]),
         jnp.concatenate([prm["gamma"] for prm in params]),
         jnp.concatenate([prm["beta"] for prm in params])],
        axis=1).astype(jnp.float32)                                   # (C_tot, 3)

    # --- tiny halo side-array: only the 2p columns straddling each tile boundary
    #     ('same' zero padding at the sequence ends).  x itself is NOT rewritten.
    starts = jnp.arange(n_l) * tile_l
    offs = jnp.concatenate([jnp.arange(-p, 0), jnp.arange(tile_l, tile_l + p)])
    idx = starts[:, None] + offs[None, :]                             # (n_l, 2p)
    valid = (idx >= 0) & (idx < L)
    gathered = jnp.take(x_ncl, jnp.clip(idx, 0, L - 1), axis=2)       # (B, C_in, n_l, 2p)
    halos = jnp.where(valid[None, None], gathered, 0)
    halos = jnp.transpose(halos, (0, 2, 1, 3)).astype(cdt)            # (B, n_l, C_in, 2p)

    x_in = x_ncl.astype(cdt)

    # --- megacore-friendly grid ordering: larger parallel extent leads (v7x: 2 TCs).
    if B >= n_l:
        grid = (B, n_l)
        x_map = lambda i, j: (i, 0, j)
        h_map = lambda i, j: (i, j, 0, 0)
        o_map = lambda i, j: (i, 0, j)
    else:
        grid = (n_l, B)
        x_map = lambda i, j: (j, 0, i)
        h_map = lambda i, j: (j, i, 0, 0)
        o_map = lambda i, j: (j, 0, i)
    w_map = lambda i, j: (0, 0, 0)
    s_map = lambda i, j: (0, 0)

    kernel = functools.partial(_msc_kernel, n_branch=n_branch, c_out=c_out,
                               k_max=k_max, eps=eps, approx_recip=approx_recip)

    cost = pl.CostEstimate(
        flops=int(2 * B * L * c_tot * c_in * k_max + 16 * B * L * c_tot),
        transcendentals=int(2 * B * L * c_tot),
        bytes_accessed=int(B * c_in * L * itm_c + halos.size * itm_c
                           + w_fused.size * itm_c + scale_shift.size * 4
                           + B * c_tot * L * itm_o))

    return pl.pallas_call(
        kernel,
        out_shape=jax.ShapeDtypeStruct((B, c_tot, L), out_dtype),
        grid_spec=pltpu.PrefetchScalarGridSpec(
            num_scalar_prefetch=0,
            grid=grid,
            in_specs=[
                pl.BlockSpec((1, c_in, tile_l), x_map),
                pl.BlockSpec((1, 1, c_in, 2 * p), h_map),
                pl.BlockSpec((k_max, c_tot, c_in), w_map),
                pl.BlockSpec((c_tot, 3), s_map),
            ],
            out_specs=pl.BlockSpec((1, c_tot, tile_l), o_map),
            scratch_shapes=[pltpu.VMEM((c_in, tile_l + 2 * p), cdt)],
        ),
        compiler_params=pltpu.CompilerParams(**cp),
        cost_estimate=cost,
    )(x_in, halos, w_fused, scale_shift)


# ---------- pure-JAX reference (for correctness check only) ----------
def _reference(x_ncl, params, kernel_sizes=(3, 5, 7), eps=1e-5):
    outs = []
    for k, prm in zip(kernel_sizes, params):
        pad = (k - 1) // 2
        y = jax.lax.conv_general_dilated(
            x_ncl, prm["w"], window_strides=(1,), padding=[(pad, pad)],
            dimension_numbers=("NCH", "OIH", "NCH"),
        ) + prm["b"][None, :, None]
        y = jnp.transpose(y, (0, 2, 1))  # (B, L, C_out)
        mean = jnp.mean(y, axis=-1, keepdims=True)
        var = jnp.mean((y - mean) ** 2, axis=-1, keepdims=True)
        y = (y - mean) / jnp.sqrt(var + eps) * prm["gamma"] + prm["beta"]
        y = jnp.transpose(y, (0, 2, 1))  # (B, C_out, L)
        y = y * jnp.tanh(jnp.logaddexp(0.0, y))  # Mish
        outs.append(y)
    return jnp.concatenate(outs, axis=1)


def _make_params(key, c_in, c_out, kernel_sizes):
    keys = jax.random.split(key, 2 * len(kernel_sizes))
    params = []
    for i, k in enumerate(kernel_sizes):
        fan_in = c_in * k
        bound = 1.0 / float(fan_in) ** 0.5
        params.append({
            "w": jax.random.uniform(keys[2 * i], (c_out, c_in, k), jnp.float32,
                                    -bound, bound),
            "b": jax.random.uniform(keys[2 * i + 1], (c_out,), jnp.float32,
                                    -bound, bound),
            "gamma": jnp.ones((c_out,), jnp.float32),
            "beta": jnp.zeros((c_out,), jnp.float32),
        })
    return params


if __name__ == "__main__":
    key = jax.random.PRNGKey(0)
    kernel_sizes = (3, 5, 7)
    B, C_in, C_out = 2, 4, 8
    k1, k2, k3 = jax.random.split(key, 3)
    params = _make_params(k2, C_in, C_out, kernel_sizes)

    # Test 1: small L (single tile), exact math path (no approx reciprocal), tight check.
    L1 = 16
    x1 = jax.random.normal(k1, (B, C_in, L1), dtype=jnp.float32)
    out1 = jax.block_until_ready(
        multi_scale_cnn_block(x1, params, kernel_sizes, approx_recip=False))
    ref1 = _reference(x1, params, kernel_sizes)
    assert out1.shape == (B, len(kernel_sizes) * C_out, L1), out1.shape
    assert jnp.allclose(out1, ref1, atol=1e-4, rtol=1e-4), "mismatch (L=16, exact)"

    # Test 2: exercises L tiling with halos, the l-major megacore grid ordering and the
    # approx-reciprocal Mish path (looser tolerance for the EUP approximation).
    L2 = 512
    x2 = jax.random.normal(k3, (B, C_in, L2), dtype=jnp.float32)
    out2 = jax.block_until_ready(
        multi_scale_cnn_block(x2, params, kernel_sizes, tile_l=128))
    ref2 = _reference(x2, params, kernel_sizes)
    assert out2.shape == (B, len(kernel_sizes) * C_out, L2), out2.shape
    assert jnp.allclose(out2, ref2, atol=2e-2, rtol=2e-2), "mismatch (L=512, tiled)"

    # Test 3: bfloat16 compute path (f32 accumulation / LN / Mish) — sanity bound.
    out3 = jax.block_until_ready(
        multi_scale_cnn_block(x2, params, kernel_sizes, tile_l=128,
                              compute_dtype=jnp.bfloat16))
    assert float(jnp.max(jnp.abs(out3 - ref2))) < 0.25, "bf16 path diverged"

    print("KERNEL_OK")
</pallas_src>

<mosaic_0001>
module attributes {stable_mosaic.version = 11 : i64} {
  func.func @_msc_kernel(%arg0: i32, %arg1: i32, %arg2: memref<1x4x16xf32, #tpu.memory_space<vmem>>, %arg3: memref<1x1x4x6xf32, #tpu.memory_space<vmem>>, %arg4: memref<7x24x4xf32, #tpu.memory_space<vmem>>, %arg5: memref<24x3xf32, #tpu.memory_space<vmem>>, %arg6: memref<1x24x16xf32, #tpu.memory_space<vmem>>, %arg7: memref<4x22xf32, #tpu.memory_space<vmem>>) attributes {dimension_semantics = [#tpu.dimension_semantics<parallel>, #tpu.dimension_semantics<parallel>], iteration_bounds = array<i64: 2, 1>, scalar_prefetch = 0 : i64, scratch_operands = 1 : i64, tpu.core_type = #tpu.core_type<tc>, window_params = [{transform_indices = @transform_0, window_bounds = array<i64: 1, 4, 16>}, {transform_indices = @transform_1, window_bounds = array<i64: 1, 1, 4, 6>}, {pipeline_mode = #tpu.pipeline_mode<synchronous>, transform_indices = @transform_2, window_bounds = array<i64: 7, 24, 4>}, {pipeline_mode = #tpu.pipeline_mode<synchronous>, transform_indices = @transform_3, window_bounds = array<i64: 24, 3>}, {transform_indices = @transform_4, window_bounds = array<i64: 1, 24, 16>}]} {
    %c0 = arith.constant 0 : index
    %c0_0 = arith.constant 0 : index
    %c0_1 = arith.constant 0 : index
    %c0_2 = arith.constant 0 : index
    %0 = vector.load %arg3[%c0, %c0_0, %c0_1, %c0_2] : memref<1x1x4x6xf32, #tpu.memory_space<vmem>>, vector<1x1x4x3xf32>
    %1 = vector.shape_cast %0 : vector<1x1x4x3xf32> to vector<4x3xf32>
    %c0_3 = arith.constant 0 : index
    %c0_4 = arith.constant 0 : index
    %2 = vector.load %arg7[%c0_3, %c0_4] : memref<4x22xf32, #tpu.memory_space<vmem>>, vector<4x3xf32>
    tpu.vector_store %arg7[%c0_3, %c0_4], %1 {strides = array<i32>} : memref<4x22xf32, #tpu.memory_space<vmem>>, vector<4x3xf32>,
    %c0_5 = arith.constant 0 : index
    %c0_6 = arith.constant 0 : index
    %c0_7 = arith.constant 0 : index
    %3 = vector.load %arg2[%c0_5, %c0_6, %c0_7] : memref<1x4x16xf32, #tpu.memory_space<vmem>>, vector<1x4x16xf32>
    %4 = vector.shape_cast %3 : vector<1x4x16xf32> to vector<4x16xf32>
    %c0_8 = arith.constant 0 : index
    %c3 = arith.constant 3 : index
    %5 = vector.load %arg7[%c0_8, %c3] : memref<4x22xf32, #tpu.memory_space<vmem>>, vector<4x16xf32>
    tpu.vector_store %arg7[%c0_8, %c3], %4 {strides = array<i32>} : memref<4x22xf32, #tpu.memory_space<vmem>>, vector<4x16xf32>,
    %c0_9 = arith.constant 0 : index
    %c0_10 = arith.constant 0 : index
    %c0_11 = arith.constant 0 : index
    %c3_12 = arith.constant 3 : index
    %6 = vector.load %arg3[%c0_9, %c0_10, %c0_11, %c3_12] : memref<1x1x4x6xf32, #tpu.memory_space<vmem>>, vector<1x1x4x3xf32>
    %7 = vector.shape_cast %6 : vector<1x1x4x3xf32> to vector<4x3xf32>
    %c0_13 = arith.constant 0 : index
    %c19 = arith.constant 19 : index
    %8 = vector.load %arg7[%c0_13, %c19] : memref<4x22xf32, #tpu.memory_space<vmem>>, vector<4x3xf32>
    tpu.vector_store %arg7[%c0_13, %c19], %7 {strides = array<i32>} : memref<4x22xf32, #tpu.memory_space<vmem>>, vector<4x3xf32>,
    %c0_14 = arith.constant 0 : index
    %c0_15 = arith.constant 0 : index
    %c0_16 = arith.constant 0 : index
    %9 = vector.load %arg4[%c0_14, %c0_15, %c0_16] : memref<7x24x4xf32, #tpu.memory_space<vmem>>, vector<1x24x4xf32>
    %10 = vector.shape_cast %9 : vector<1x24x4xf32> to vector<24x4xf32>
    %c0_17 = arith.constant 0 : index
    %c0_18 = arith.constant 0 : index
    %11 = vector.load %arg7[%c0_17, %c0_18] : memref<4x22xf32, #tpu.memory_space<vmem>>, vector<4x16xf32>
    %cst = arith.constant dense<0.000000e+00> : vector<24x16xf32>
    %12 = tpu.matmul %10, %11, %cst {dimension_numbers = #tpu.dot_dimension_numbers<[1], [0], [0], [1], [0, 0, 1, 1], [], []>} : vector<24x4xf32>, vector<4x16xf32>, vector<24x16xf32> -> vector<24x16xf32>
    %c1 = arith.constant 1 : index
    %c0_19 = arith.constant 0 : index
    %c0_20 = arith.constant 0 : index
    %13 = vector.load %arg4[%c1, %c0_19, %c0_20] : memref<7x24x4xf32, #tpu.memory_space<vmem>>, vector<1x24x4xf32>
    %14 = vector.shape_cast %13 : vector<1x24x4xf32> to vector<24x4xf32>
    %c0_21 = arith.constant 0 : index
    %c1_22 = arith.constant 1 : index
    %15 = vector.load %arg7[%c0_21, %c1_22] : memref<4x22xf32, #tpu.memory_space<vmem>>, vector<4x16xf32>
    %cst_23 = arith.constant dense<0.000000e+00> : vector<24x16xf32>
    %16 = tpu.matmul %14, %15, %cst_23 {dimension_numbers = #tpu.dot_dimension_numbers<[1], [0], [0], [1], [0, 0, 1, 1], [], []>} : vector<24x4xf32>, vector<4x16xf32>, vector<24x16xf32> -> vector<24x16xf32>
    %17 = arith.addf %12, %16 : vector<24x16xf32>
    %c2 = arith.constant 2 : index
    %c0_24 = arith.constant 0 : index
    %c0_25 = arith.constant 0 : index
    %18 = vector.load %arg4[%c2, %c0_24, %c0_25] : memref<7x24x4xf32, #tpu.memory_space<vmem>>, vector<1x24x4xf32>
    %19 = vector.shape_cast %18 : vector<1x24x4xf32> to vector<24x4xf32>
    %c0_26 = arith.constant 0 : index
    %c2_27 = arith.constant 2 : index
    %20 = vector.load %arg7[%c0_26, %c2_27] : memref<4x22xf32, #tpu.memory_space<vmem>>, vector<4x16xf32>
    %cst_28 = arith.constant dense<0.000000e+00> : vector<24x16xf32>
    %21 = tpu.matmul %19, %20, %cst_28 {dimension_numbers = #tpu.dot_dimension_numbers<[1], [0], [0], [1], [0, 0, 1, 1], [], []>} : vector<24x4xf32>, vector<4x16xf32>, vector<24x16xf32> -> vector<24x16xf32>
    %22 = arith.addf %17, %21 : vector<24x16xf32>
    %c3_29 = arith.constant 3 : index
    %c0_30 = arith.constant 0 : index
    %c0_31 = arith.constant 0 : index
    %23 = vector.load %arg4[%c3_29, %c0_30, %c0_31] : memref<7x24x4xf32, #tpu.memory_space<vmem>>, vector<1x24x4xf32>
    %24 = vector.shape_cast %23 : vector<1x24x4xf32> to vector<24x4xf32>
    %c0_32 = arith.constant 0 : index
    %c3_33 = arith.constant 3 : index
    %25 = vector.load %arg7[%c0_32, %c3_33] : memref<4x22xf32, #tpu.memory_space<vmem>>, vector<4x16xf32>
    %cst_34 = arith.constant dense<0.000000e+00> : vector<24x16xf32>
    %26 = tpu.matmul %24, %25, %cst_34 {dimension_numbers = #tpu.dot_dimension_numbers<[1], [0], [0], [1], [0, 0, 1, 1], [], []>} : vector<24x4xf32>, vector<4x16xf32>, vector<24x16xf32> -> vector<24x16xf32>
    %27 = arith.addf %22, %26 : vector<24x16xf32>
    %c4 = arith.constant 4 : index
    %c0_35 = arith.constant 0 : index
    %c0_36 = arith.constant 0 : index
    %28 = vector.load %arg4[%c4, %c0_35, %c0_36] : memref<7x24x4xf32, #tpu.memory_space<vmem>>, vector<1x24x4xf32>
    %29 = vector.shape_cast %28 : vector<1x24x4xf32> to vector<24x4xf32>
    %c0_37 = arith.constant 0 : index
    %c4_38 = arith.constant 4 : index
    %30 = vector.load %arg7[%c0_37, %c4_38] : memref<4x22xf32, #tpu.memory_space<vmem>>, vector<4x16xf32>
    %cst_39 = arith.constant dense<0.000000e+00> : vector<24x16xf32>
    %31 = tpu.matmul %29, %30, %cst_39 {dimension_numbers = #tpu.dot_dimension_numbers<[1], [0], [0], [1], [0, 0, 1, 1], [], []>} : vector<24x4xf32>, vector<4x16xf32>, vector<24x16xf32> -> vector<24x16xf32>
    %32 = arith.addf %27, %31 : vector<24x16xf32>
    %c5 = arith.constant 5 : index
    %c0_40 = arith.constant 0 : index
    %c0_41 = arith.constant 0 : index
    %33 = vector.load %arg4[%c5, %c0_40, %c0_41] : memref<7x24x4xf32, #tpu.memory_space<vmem>>, vector<1x24x4xf32>
    %34 = vector.shape_cast %33 : vector<1x24x4xf32> to vector<24x4xf32>
    %c0_42 = arith.constant 0 : index
    %c5_43 = arith.constant 5 : index
    %35 = vector.load %arg7[%c0_42, %c5_43] : memref<4x22xf32, #tpu.memory_space<vmem>>, vector<4x16xf32>
    %cst_44 = arith.constant dense<0.000000e+00> : vector<24x16xf32>
    %36 = tpu.matmul %34, %35, %cst_44 {dimension_numbers = #tpu.dot_dimension_numbers<[1], [0], [0], [1], [0, 0, 1, 1], [], []>} : vector<24x4xf32>, vector<4x16xf32>, vector<24x16xf32> -> vector<24x16xf32>
    %37 = arith.addf %32, %36 : vector<24x16xf32>
    %c6 = arith.constant 6 : index
    %c0_45 = arith.constant 0 : index
    %c0_46 = arith.constant 0 : index
    %38 = vector.load %arg4[%c6, %c0_45, %c0_46] : memref<7x24x4xf32, #tpu.memory_space<vmem>>, vector<1x24x4xf32>
    %39 = vector.shape_cast %38 : vector<1x24x4xf32> to vector<24x4xf32>
    %c0_47 = arith.constant 0 : index
    %c6_48 = arith.constant 6 : index
    %40 = vector.load %arg7[%c0_47, %c6_48] : memref<4x22xf32, #tpu.memory_space<vmem>>, vector<4x16xf32>
    %cst_49 = arith.constant dense<0.000000e+00> : vector<24x16xf32>
    %41 = tpu.matmul %39, %40, %cst_49 {dimension_numbers = #tpu.dot_dimension_numbers<[1], [0], [0], [1], [0, 0, 1, 1], [], []>} : vector<24x4xf32>, vector<4x16xf32>, vector<24x16xf32> -> vector<24x16xf32>
    %42 = arith.addf %37, %41 : vector<24x16xf32>
    %c0_50 = arith.constant 0 : index
    %c0_51 = arith.constant 0 : index
    %43 = vector.load %arg5[%c0_50, %c0_51] : memref<24x3xf32, #tpu.memory_space<vmem>>, vector<24x3xf32>
    %44 = vector.extract_strided_slice %43 {offsets = [0, 0], sizes = [24, 1], strides = [1, 1]} : vector<24x3xf32> to vector<24x1xf32>
    %45 = vector.broadcast %44 : vector<24x1xf32> to vector<24x16xf32>
    %46 = arith.addf %42, %45 : vector<24x16xf32>
    %47 = vector.extract_strided_slice %46 {offsets = [0, 0], sizes = [8, 16], strides = [1, 1]} : vector<24x16xf32> to vector<8x16xf32>
    %cst_52 = arith.constant dense<0.000000e+00> : vector<16xf32>
    %48 = vector.multi_reduction <add>, %47, %cst_52 [0] : vector<8x16xf32> to vector<16xf32>
    %49 = vector.shape_cast %48 : vector<16xf32> to vector<1x16xf32>
    %cst_53 = arith.constant 1.250000e-01 : f32
    %50 = vector.broadcast %cst_53 : f32 to vector<1x16xf32>
    %51 = arith.mulf %49, %50 : vector<1x16xf32>
    %52 = arith.mulf %47, %47 : vector<8x16xf32>
    %cst_54 = arith.constant dense<0.000000e+00> : vector<16xf32>
    %53 = vector.multi_reduction <add>, %52, %cst_54 [0] : vector<8x16xf32> to vector<16xf32>
    %54 = vector.shape_cast %53 : vector<16xf32> to vector<1x16xf32>
    %cst_55 = arith.constant 1.250000e-01 : f32
    %55 = vector.broadcast %cst_55 : f32 to vector<1x16xf32>
    %56 = arith.mulf %54, %55 : vector<1x16xf32>
    %57 = arith.mulf %51, %51 : vector<1x16xf32>
    %58 = arith.subf %56, %57 : vector<1x16xf32>
    %cst_56 = arith.constant 9.99999974E-6 : f32
    %59 = vector.broadcast %cst_56 : f32 to vector<1x16xf32>
    %60 = arith.addf %58, %59 : vector<1x16xf32>
    %61 = math.rsqrt %60 : vector<1x16xf32>
    %62 = vector.extract_strided_slice %43 {offsets = [0, 1], sizes = [8, 1], strides = [1, 1]} : vector<24x3xf32> to vector<8x1xf32>
    %63 = vector.broadcast %61 : vector<1x16xf32> to vector<8x16xf32>
    %64 = vector.broadcast %62 : vector<8x1xf32> to vector<8x16xf32>
    %65 = arith.mulf %63, %64 : vector<8x16xf32>
    %66 = arith.mulf %47, %65 : vector<8x16xf32>
    %67 = vector.extract_strided_slice %43 {offsets = [0, 2], sizes = [8, 1], strides = [1, 1]} : vector<24x3xf32> to vector<8x1xf32>
    %68 = vector.broadcast %51 : vector<1x16xf32> to vector<8x16xf32>
    %69 = arith.mulf %68, %65 : vector<8x16xf32>
    %70 = vector.broadcast %67 : vector<8x1xf32> to vector<8x16xf32>
    %71 = arith.subf %70, %69 : vector<8x16xf32>
    %72 = arith.addf %66, %71 : vector<8x16xf32>
    %cst_57 = arith.constant 2.000000e+01 : f32
    %73 = vector.broadcast %cst_57 : f32 to vector<8x16xf32>
    %74 = arith.minimumf %72, %73 : vector<8x16xf32>
    %75 = math.exp %74 : vector<8x16xf32>
    %cst_58 = arith.constant 2.000000e+00 : f32
    %76 = vector.broadcast %cst_58 : f32 to vector<8x16xf32>
    %77 = arith.addf %75, %76 : vector<8x16xf32>
    %78 = arith.mulf %75, %77 : vector<8x16xf32>
    %cst_59 = arith.constant 2.000000e+00 : f32
    %79 = vector.broadcast %cst_59 : f32 to vector<8x16xf32>
    %80 = arith.addf %78, %79 : vector<8x16xf32>
    %81 = arith.divf %78, %80 : vector<8x16xf32>
    %82 = arith.mulf %72, %81 : vector<8x16xf32>
    %c0_60 = arith.constant 0 : index
    %c0_61 = arith.constant 0 : index
    %c0_62 = arith.constant 0 : index
    %83 = vector.load %arg6[%c0_60, %c0_61, %c0_62] : memref<1x24x16xf32, #tpu.memory_space<vmem>>, vector<1x8x16xf32>
    %84 = vector.shape_cast %83 : vector<1x8x16xf32> to vector<8x16xf32>
    %85 = vector.shape_cast %82 : vector<8x16xf32> to vector<1x8x16xf32>
    tpu.vector_store %arg6[%c0_60, %c0_61, %c0_62], %85 {strides = array<i32>} : memref<1x24x16xf32, #tpu.memory_space<vmem>>, vector<1x8x16xf32>,
    %86 = vector.extract_strided_slice %46 {offsets = [8, 0], sizes = [8, 16], strides = [1, 1]} : vector<24x16xf32> to vector<8x16xf32>
    %cst_63 = arith.constant dense<0.000000e+00> : vector<16xf32>
    %87 = vector.multi_reduction <add>, %86, %cst_63 [0] : vector<8x16xf32> to vector<16xf32>
    %88 = vector.shape_cast %87 : vector<16xf32> to vector<1x16xf32>
    %cst_64 = arith.constant 1.250000e-01 : f32
    %89 = vector.broadcast %cst_64 : f32 to vector<1x16xf32>
    %90 = arith.mulf %88, %89 : vector<1x16xf32>
    %91 = arith.mulf %86, %86 : vector<8x16xf32>
    %cst_65 = arith.constant dense<0.000000e+00> : vector<16xf32>
    %92 = vector.multi_reduction <add>, %91, %cst_65 [0] : vector<8x16xf32> to vector<16xf32>
    %93 = vector.shape_cast %92 : vector<16xf32> to vector<1x16xf32>
    %cst_66 = arith.constant 1.250000e-01 : f32
    %94 = vector.broadcast %cst_66 : f32 to vector<1x16xf32>
    %95 = arith.mulf %93, %94 : vector<1x16xf32>
    %96 = arith.mulf %90, %90 : vector<1x16xf32>
    %97 = arith.subf %95, %96 : vector<1x16xf32>
    %cst_67 = arith.constant 9.99999974E-6 : f32
    %98 = vector.broadcast %cst_67 : f32 to vector<1x16xf32>
    %99 = arith.addf %97, %98 : vector<1x16xf32>
    %100 = math.rsqrt %99 : vector<1x16xf32>
    %101 = vector.extract_strided_slice %43 {offsets = [8, 1], sizes = [8, 1], strides = [1, 1]} : vector<24x3xf32> to vector<8x1xf32>
    %102 = vector.broadcast %100 : vector<1x16xf32> to vector<8x16xf32>
    %103 = vector.broadcast %101 : vector<8x1xf32> to vector<8x16xf32>
    %104 = arith.mulf %102, %103 : vector<8x16xf32>
    %105 = arith.mulf %86, %104 : vector<8x16xf32>
    %106 = vector.extract_strided_slice %43 {offsets = [8, 2], sizes = [8, 1], strides = [1, 1]} : vector<24x3xf32> to vector<8x1xf32>
    %107 = vector.broadcast %90 : vector<1x16xf32> to vector<8x16xf32>
    %108 = arith.mulf %107, %104 : vector<8x16xf32>
    %109 = vector.broadcast %106 : vector<8x1xf32> to vector<8x16xf32>
    %110 = arith.subf %109, %108 : vector<8x16xf32>
    %111 = arith.addf %105, %110 : vector<8x16xf32>
    %cst_68 = arith.constant 2.000000e+01 : f32
    %112 = vector.broadcast %cst_68 : f32 to vector<8x16xf32>
    %113 = arith.minimumf %111, %112 : vector<8x16xf32>
    %114 = math.exp %113 : vector<8x16xf32>
    %cst_69 = arith.constant 2.000000e+00 : f32
    %115 = vector.broadcast %cst_69 : f32 to vector<8x16xf32>
    %116 = arith.addf %114, %115 : vector<8x16xf32>
    %117 = arith.mulf %114, %116 : vector<8x16xf32>
    %cst_70 = arith.constant 2.000000e+00 : f32
    %118 = vector.broadcast %cst_70 : f32 to vector<8x16xf32>
    %119 = arith.addf %117, %118 : vector<8x16xf32>
    %120 = arith.divf %117, %119 : vector<8x16xf32>
    %121 = arith.mulf %111, %120 : vector<8x16xf32>
    %c0_71 = arith.constant 0 : index
    %c8 = arith.constant 8 : index
    %c0_72 = arith.constant 0 : index
    %122 = vector.load %arg6[%c0_71, %c8, %c0_72] : memref<1x24x16xf32, #tpu.memory_space<vmem>>, vector<1x8x16xf32>
    %123 = vector.shape_cast %122 : vector<1x8x16xf32> to vector<8x16xf32>
    %124 = vector.shape_cast %121 : vector<8x16xf32> to vector<1x8x16xf32>
    tpu.vector_store %arg6[%c0_71, %c8, %c0_72], %124 {strides = array<i32>} : memref<1x24x16xf32, #tpu.memory_space<vmem>>, vector<1x8x16xf32>,
    %125 = vector.extract_strided_slice %46 {offsets = [16, 0], sizes = [8, 16], strides = [1, 1]} : vector<24x16xf32> to vector<8x16xf32>
    %cst_73 = arith.constant dense<0.000000e+00> : vector<16xf32>
    %126 = vector.multi_reduction <add>, %125, %cst_73 [0] : vector<8x16xf32> to vector<16xf32>
    %127 = vector.shape_cast %126 : vector<16xf32> to vector<1x16xf32>
    %cst_74 = arith.constant 1.250000e-01 : f32
    %128 = vector.broadcast %cst_74 : f32 to vector<1x16xf32>
    %129 = arith.mulf %127, %128 : vector<1x16xf32>
    %130 = arith.mulf %125, %125 : vector<8x16xf32>
    %cst_75 = arith.constant dense<0.000000e+00> : vector<16xf32>
    %131 = vector.multi_reduction <add>, %130, %cst_75 [0] : vector<8x16xf32> to vector<16xf32>
    %132 = vector.shape_cast %131 : vector<16xf32> to vector<1x16xf32>
    %cst_76 = arith.constant 1.250000e-01 : f32
    %133 = vector.broadcast %cst_76 : f32 to vector<1x16xf32>
    %134 = arith.mulf %132, %133 : vector<1x16xf32>
    %135 = arith.mulf %129, %129 : vector<1x16xf32>
    %136 = arith.subf %134, %135 : vector<1x16xf32>
    %cst_77 = arith.constant 9.99999974E-6 : f32
    %137 = vector.broadcast %cst_77 : f32 to vector<1x16xf32>
    %138 = arith.addf %136, %137 : vector<1x16xf32>
    %139 = math.rsqrt %138 : vector<1x16xf32>
    %140 = vector.extract_strided_slice %43 {offsets = [16, 1], sizes = [8, 1], strides = [1, 1]} : vector<24x3xf32> to vector<8x1xf32>
    %141 = vector.broadcast %139 : vector<1x16xf32> to vector<8x16xf32>
    %142 = vector.broadcast %140 : vector<8x1xf32> to vector<8x16xf32>
    %143 = arith.mulf %141, %142 : vector<8x16xf32>
    %144 = arith.mulf %125, %143 : vector<8x16xf32>
    %145 = vector.extract_strided_slice %43 {offsets = [16, 2], sizes = [8, 1], strides = [1, 1]} : vector<24x3xf32> to vector<8x1xf32>
    %146 = vector.broadcast %129 : vector<1x16xf32> to vector<8x16xf32>
    %147 = arith.mulf %146, %143 : vector<8x16xf32>
    %148 = vector.broadcast %145 : vector<8x1xf32> to vector<8x16xf32>
    %149 = arith.subf %148, %147 : vector<8x16xf32>
    %150 = arith.addf %144, %149 : vector<8x16xf32>
    %cst_78 = arith.constant 2.000000e+01 : f32
    %151 = vector.broadcast %cst_78 : f32 to vector<8x16xf32>
    %152 = arith.minimumf %150, %151 : vector<8x16xf32>
    %153 = math.exp %152 : vector<8x16xf32>
    %cst_79 = arith.constant 2.000000e+00 : f32
    %154 = vector.broadcast %cst_79 : f32 to vector<8x16xf32>
    %155 = arith.addf %153, %154 : vector<8x16xf32>
    %156 = arith.mulf %153, %155 : vector<8x16xf32>
    %cst_80 = arith.constant 2.000000e+00 : f32
    %157 = vector.broadcast %cst_80 : f32 to vector<8x16xf32>
    %158 = arith.addf %156, %157 : vector<8x16xf32>
    %159 = arith.divf %156, %158 : vector<8x16xf32>
    %160 = arith.mulf %150, %159 : vector<8x16xf32>
    %c0_81 = arith.constant 0 : index
    %c16 = arith.constant 16 : index
    %c0_82 = arith.constant 0 : index
    %161 = vector.load %arg6[%c0_81, %c16, %c0_82] : memref<1x24x16xf32, #tpu.memory_space<vmem>>, vector<1x8x16xf32>
    %162 = vector.shape_cast %161 : vector<1x8x16xf32> to vector<8x16xf32>
    %163 = vector.shape_cast %160 : vector<8x16xf32> to vector<1x8x16xf32>
    tpu.vector_store %arg6[%c0_81, %c16, %c0_82], %163 {strides = array<i32>} : memref<1x24x16xf32, #tpu.memory_space<vmem>>, vector<1x8x16xf32>,
    return
  }
  func.func @transform_0(%arg0: i32, %arg1: i32) -> (i32, i32, i32) {
    %c0_i32 = arith.constant 0 : i32
    %c0_i32_0 = arith.constant 0 : i32
    return %arg0, %c0_i32, %arg1 : i32, i32, i32
  }
  func.func @transform_1(%arg0: i32, %arg1: i32) -> (i32, i32, i32, i32) {
    %c0_i32 = arith.constant 0 : i32
    %c0_i32_0 = arith.constant 0 : i32
    %c0_i32_1 = arith.constant 0 : i32
    return %arg0, %arg1, %c0_i32, %c0_i32_0 : i32, i32, i32, i32
  }
  func.func @transform_2(%arg0: i32, %arg1: i32) -> (i32, i32, i32) {
    %c0_i32 = arith.constant 0 : i32
    %c0_i32_0 = arith.constant 0 : i32
    %c0_i32_1 = arith.constant 0 : i32
    %c0_i32_2 = arith.constant 0 : i32
    return %c0_i32, %c0_i32_0, %c0_i32_1 : i32, i32, i32
  }
  func.func @transform_3(%arg0: i32, %arg1: i32) -> (i32, i32) {
    %c0_i32 = arith.constant 0 : i32
    %c0_i32_0 = arith.constant 0 : i32
    %c0_i32_1 = arith.constant 0 : i32
    return %c0_i32, %c0_i32_0 : i32, i32
  }
  func.func @transform_4(%arg0: i32, %arg1: i32) -> (i32, i32, i32) {
    %c0_i32 = arith.constant 0 : i32
    %c0_i32_0 = arith.constant 0 : i32
    return %arg0, %c0_i32, %arg1 : i32, i32, i32
  }
}

</mosaic_0001>

<bundles_post_ra>
// kernel: tpu_custom_call.1
= control target key start
LH: loop header
LB: loop body
LE: loop exit
PB: predicated region body
PF: predicated region fallthrough
CT: control target
= control target key end

     0   :  { %s1082_s15 = smov 0   ;;  %s1084_s16 = smov 0   ;;  %s1267_s0 = inlined_call_operand.vmem [shape: f32[2,4,16], index: 0, kind: input, shape index: {}]   ;;  %s1268_s1 = inlined_call_operand.vmem [shape: f32[2,1,4,6], index: 1, kind: input, shape index: {}]   ;;  %s1269_s2 = inlined_call_operand.vmem [shape: f32[7,24,4], index: 2, kind: input, shape index: {}]   ;;  %s1270_s3 = inlined_call_operand.vmem [shape: f32[24,3], index: 3, kind: input, shape index: {}]   ;;  %s1271_s4 = inlined_call_operand.vmem [shape: f32[2,24,16], index: 4, kind: output, shape index: {}]  }
   0x1   :  { %s1086_s17 = smov 0  }
   0x2 LB: > { %s26_s18 = sadd.s32 1, %s1040_s16  ;;  %p907_p0 = scmp.ge.s32.totalorder %s1044_s17, 1  ;;  %s1044_s17 = sphi %s1086_s17, %s14_s17   ;;  %s1040_s16 = sphi %s1084_s16, %s1273_s16   ;;  %s1036_s15 = sphi %s1082_s15, %s1272_s15  }
   0x3   : > { %p28_p1 = scmp.ge.s32.totalorder %s26_s18, 2  ;;  %p194_p2 = scmp.lt.s32.totalorder %s1044_s17, 3 }
   0x5   : > { %s1275_s18 = smov (%p28_p1, %s26_s18), 0  ;;  %p195_p3 = pnand %p907_p0, %p194_p2 }
   0x6   : > { %p232_p4 = scmp.lt.s32.totalorder (!%p195_p3), %s1036_s15, 1  ;;  %s1046_s26 = smov (!%p195_p3), 3  }
   0x7   : > { %198 = sbr.rel (%p195_p3) target bundleno = 532 (0x214), region = 36  ;;  %s1047_s27 = smov (!%p195_p3), 16  }
   0x8   : > { %s1048_s28 = smov (!%p195_p3), 124   ;;  %s1049_s29 = smov (!%p195_p3), 125  }
   0x9   : > { %s1050_s30 = smov (!%p195_p3), 126   ;;  %s1051_s5 = smov (!%p195_p3), 122  }
   0xa   : > { %s1052_s6 = smov (!%p195_p3), 127   ;;  %s1053_s7 = smov (!%p195_p3), 123  }
   0xc   : > { %s1277_s15 = smov (!%p232_p4, %s1036_s15), 1  ;;  %vm255_vm0 = vcmask 19456   ;;  %vm262_vm1 = vcmask 150552   ;;  %vm269_vm2 = vcmask 175256   ;;  %vm292_vm3 = vcmask 1043456   ;;  %v271_v6 = vld [vmem:[%s1269_s2] sm:$0xff] }
   0xd   : > { %s908_s19 = sshll.u32 %s1277_s15, 2  ;;  %vm282_vm4 = vcmask 31744   ;;  %v272_v7 = vld [vmem:[%s1269_s2 + $0x8] sm:$0xff]  ;;  %v273_v9 = vld [vmem:[%s1269_s2 + $0x10] sm:$0xff]  ;;  %v912_v13 = vld [vmem:[%s1269_s2 + $0x20] sm:$0xff]  ;;  %v1054_v19 = vmov 0  }
   0xe   : > { %s238_s22 = scalar_lea.vmem %s1267_s0, %s908_s19  ;;  %s245_s25 = scalar_lea.vmem %s1268_s1, %s908_s19  ;;  %v922_v11 = vld [vmem:[%s1269_s2 + $0x30] sm:$0xff]  ;;  %v923_v15 = vld [vmem:[%s1269_s2 + $0x38] sm:$0xff]  ;;  %v589_v18 = vld [vmem:[%s1270_s3 + $0x8] sm:$0xff]  ;;  %997 = vset.pattern.permute.xlu0 %v1054_v19  ;;  %998 = vset.pattern.permute.xlu1 %v1054_v19  ;;  %v1055_v27 = vmov 2   ;;  %v1056_v28 = vmov 1   ;;  %vm609_vm5 = vcmask 130048  }
   0xf   : > { %v257_v0 = vld [vmem:[%s238_s22] sm:$0xf]  ;;  %v911_v17 = vld [vmem:[%s1269_s2 + $0x18] sm:$0xff]  ;;  %v590_v20 = vld [vmem:[%s1270_s3 + $0x10] sm:$0xff]  ;;  %996 = vset.pattern.permute.xlu2 %v1054_v19  ;;  %s960_s12 = smul.u32 24, %s1277_s15 }
  0x10   : > { %v254_v1 = vld [vmem:[%s245_s25] sm:$0xf]  ;;  %259 = vrot.lane.b32.xlu0 %v257_v0, %s1046_s26  ;;  %v913_v22 = vld [vmem:[%s1269_s2 + $0x28] sm:$0xff]  ;;  %v943_v23 = vld [vmem:[%s1269_s2 + $0x78] sm:$0xff] }
  0x11   : > { %256 = vst.msk [vmem:[#allocation2] sm:$0xf] %vm255_vm0, %v254_v1  ;;  %v264_v2 = vld [vmem:[%s245_s25] sm:$0xf]  ;;  %v929_v29 = vld [vmem:[%s1269_s2 + $0x48] sm:$0xff]  ;;  %v950_v31 = vld [vmem:[%s1269_s2 + $0x90] sm:$0xff]  ;;  %s1247_s19 = scalar_lea.vmem %s1271_s4, %s960_s12 }
  0x12   : > { %v588_v21 = vld [vmem:[%s1270_s3] sm:$0xff]  ;;  %v937_v32 = vld [vmem:[%s1269_s2 + $0x68] sm:$0xff]  ;;  %v930_v33 = vld [vmem:[%s1269_s2 + $0x50] sm:$0xff] }
  0x13   : > { %v924_v25 = vld [vmem:[%s1269_s2 + $0x40] sm:$0xff]  ;;  %v945_v34 = vld [vmem:[%s1269_s2 + $0x88] sm:$0xff]  ;;  %v951_v35 = vld [vmem:[%s1269_s2 + $0x98] sm:$0xff] }
  0x14   : > { %v936_v26 = vld [vmem:[%s1269_s2 + $0x60] sm:$0xff]  ;;  %v938_v36 = vld [vmem:[%s1269_s2 + $0x70] sm:$0xff]  ;;  %v931_v37 = vld [vmem:[%s1269_s2 + $0x58] sm:$0xff] }
  0x15   : > { %v944_v30 = vld [vmem:[%s1269_s2 + $0x80] sm:$0xff] }
  0x16   : > { %v952_v38 = vld [vmem:[%s1269_s2 + $0xa0] sm:$0xff] }
  0x18   : > { %266 = vrot.lane.b32.xlu0 %v264_v2, %s1047_s27 }
  0x82   : > { %v260_v3 = vpop.permute.xlu0 %259 }
  0x83   : > { %263 = vst.msk [vmem:[#allocation2] sm:$0xf] %vm262_vm1, %v260_v3 }
  0x8a   : > { %v267_v4 = vpop.permute.xlu0 %266 }
  0x8b   : > { %270 = vst.msk [vmem:[#allocation2] sm:$0xf] %vm269_vm2, %v267_v4 }
  0x92   : > { %v274_v5 = vld [vmem:[#allocation2] sm:$0xf] }
  0x93   : > { %454 = vrot.lane.b32.xlu0 %v274_v5, %s1048_s28  ;;  %408 = vrot.lane.b32.xlu2 %v274_v5, %s1049_s29 }
  0x94   : > { %362 = vrot.lane.b32.xlu1 %v274_v5, %s1050_s30  ;;  %918 = vmatpush.msk.msra.mxu1 %vm292_vm3, %v274_v5 }
  0x95   : > { %919 = vmatmul.msk.f32.vlgmr.msra.gmra.mxu1 %vm282_vm4, %v271_v6 }
  0x9b   : > { %546 = vrot.lane.b32.xlu2 %v274_v5, %s1051_s5  ;;  %598 = vperm.xlu0 %997, %v589_v18  }
  0x9c   : > { %280 = vrot.lane.b32.xlu1 %v274_v5, %s1052_s6 }
  0x9d   : > { %920 = vmatmul.msk.f32.gmra.mxu1 %vm282_vm4, %v272_v7 }
  0xa3   : > { %593 = vperm.xlu2 %996, %v588_v21   ;;  %1001 = vset.pattern.permute.xlu0 %v1055_v27 }
  0xa4   : > { %500 = vrot.lane.b32.xlu1 %v274_v5, %s1053_s7  ;;  %648 = vperm.xlu0 %1001, %v588_v21  }
  0xa5   : > { %921 = vmatmul.msk.f32.gmra.mxu1 %vm282_vm4, %v273_v9 }
  0xab   : > { %999 = vset.pattern.permute.xlu2 %v1056_v28 }
  0xac   : > { %603 = vperm.xlu1 %998, %v590_v20   ;;  %641 = vperm.xlu2 %999, %v588_v21  }
  0xb4   : > { %1000 = vset.pattern.permute.xlu1 %v1056_v28  ;;  %773 = vperm.xlu2 %999, %v590_v20  }
  0xb5   : > { %707 = vperm.xlu1 %1000, %v589_v18  }
  0xbc   : > { %1003 = vset.pattern.permute.xlu2 %v1055_v27 }
  0xbd   : > { %1002 = vset.pattern.permute.xlu1 %v1055_v27  ;;  %780 = vperm.xlu2 %1003, %v590_v20  }
  0xbe   : > { %714 = vperm.xlu1 %1002, %v589_v18  }
  0xed   : > { %v409_v8 = vpop.permute.xlu2 %408 }
  0xf5   : > { %v547_v12 = vpop.permute.xlu2 %546 }
  0xfd   : > { %v594_v58 = vpop.permute.xlu2 %593 }
 0x105   : > { %v455_v16 = vpop.permute.xlu0 %454 }
 0x106   : > { %v363_v10 = vpop.permute.xlu1 %362 }
 0x107   : > { %925 = vmatpush.msk.msra.mxu2 %vm292_vm3, %v363_v10 }
 0x108   : > { %926 = vmatmul.msk.f32.vlgmr.msra.gmra.mxu2 %vm282_vm4, %v922_v11 }
 0x109   : > { %953 = vmatpush.msk.msrb.mxu2 %vm292_vm3, %v547_v12 }
 0x10d   : > { %v599_v12 = vpop.permute.xlu0 %598 }
 0x10e   : > { %v281_v14 = vpop.permute.xlu1 %280 }
 0x10f   : > { %914 = vmatpush.msk.msra.mxu0 %vm292_vm3, %v281_v14  ;;  %959 = vmatpush.msk.msra.mxu3 %vm292_vm3, %v281_v14 }
 0x110   : > { %916 = vmatmul.msk.f32.vlgmr.msra.gmra.mxu3 %vm282_vm4, %v912_v13  ;;  %927 = vmatmul.msk.f32.gmra.mxu2 %vm282_vm4, %v923_v15 }
 0x111   : > { %939 = vmatpush.msk.msrb.mxu0 %vm292_vm3, %v455_v16  ;;  %932 = vmatpush.msk.msrb.mxu3 %vm292_vm3, %v409_v8 }
 0x112   : > { %915 = vmatmul.msk.f32.vlgmr.msra.gmra.mxu0 %vm282_vm4, %v911_v17  ;;  %v349_v39 = vpop.f32.mrf.mxu1 }
 0x116   : > { %v501_v24 = vpop.permute.xlu1 %500 }
 0x117   : > { %946 = vmatpush.msk.msrb.mxu1 %vm292_vm3, %v501_v24 }
 0x118   : > { %917 = vmatmul.msk.f32.gmra.mxu3 %vm282_vm4, %v913_v22  ;;  %947 = vmatmul.msk.f32.vlgmr.msrb.gmra.mxu1 %vm282_vm4, %v943_v23 }
 0x119   : > { %928 = vmatmul.msk.f32.gmra.mxu2 %vm282_vm4, %v924_v25 }
 0x11a   : > { %940 = vmatmul.msk.f32.vlgmr.msrb.gmra.mxu0 %vm282_vm4, %v936_v26  ;;  %v352_v41 = vpop.f32.mrf.mxu1 }
 0x120   : > { %933 = vmatmul.msk.f32.vlgmr.msrb.gmra.mxu3 %vm282_vm4, %v929_v29  ;;  %948 = vmatmul.msk.f32.gmra.mxu1 %vm282_vm4, %v944_v30 }
 0x121   : > { %954 = vmatmul.msk.f32.vlgmr.msrb.gmra.mxu2 %vm282_vm4, %v950_v31 }
 0x122   : > { %941 = vmatmul.msk.f32.gmra.mxu0 %vm282_vm4, %v937_v32  ;;  %v355_v45 = vpop.f32.mrf.mxu1 }
 0x128   : > { %934 = vmatmul.msk.f32.gmra.mxu3 %vm282_vm4, %v930_v33  ;;  %949 = vmatmul.msk.f32.gmra.mxu1 %vm282_vm4, %v945_v34 }
 0x129   : > { %955 = vmatmul.msk.f32.gmra.mxu2 %vm282_vm4, %v951_v35 }
 0x12a   : > { %942 = vmatmul.msk.f32.gmra.mxu0 %vm282_vm4, %v938_v36 }
 0x130   : > { %935 = vmatmul.msk.f32.gmra.mxu3 %vm282_vm4, %v931_v37  ;;  %v604_v37 = vpop.permute.xlu1 %603 }
 0x131   : > { %956 = vmatmul.msk.f32.gmra.mxu2 %vm282_vm4, %v952_v38 }
 0x18b   : > { %v392_v40 = vpop.f32.mrf.mxu2 }
 0x18f   : > { %v312_v44 = vpop.f32.mrf.mxu0 }
 0x190   : > { %v350_v48 = vadd.f32 %v349_v39, %v312_v44 }
 0x192   : > { %v401_v51 = vadd.f32 %v392_v40, %v350_v48 }
 0x193   : > { %v315_v42 = vpop.f32.mrf.mxu3  ;;  %v395_v43 = vpop.f32.mrf.mxu2 }
 0x194   : > { %v353_v55 = vadd.f32 %v352_v41, %v315_v42 }
 0x195   : > { %v530_v50 = vpop.f32.mrf.mxu1 }
 0x196   : > { %v402_v60 = vadd.f32 %v395_v43, %v353_v55 }
 0x197   : > { %v484_v49 = vpop.f32.mrf.mxu0 }
 0x19b   : > { %v318_v46 = vpop.f32.mrf.mxu3 }
 0x19c   : > { %v398_v47 = vpop.f32.mrf.mxu2  ;;  %v356_v3 = vadd.f32 %v355_v45, %v318_v46 }
 0x19d   : > { %v533_v63 = vpop.f32.mrf.mxu1 }
 0x19e   : > { %v403_v13 = vadd.f32 %v398_v47, %v356_v3 }
 0x19f   : > { %v487_v59 = vpop.f32.mrf.mxu0 }
 0x1a3   : > { %v438_v52 = vpop.f32.mrf.mxu3 }
 0x1a4   : > { %v447_v53 = vadd.f32 %v438_v52, %v401_v51  ;;  %v576_v54 = vpop.f32.mrf.mxu2 }
 0x1a5   : > { %v536_v23 = vpop.f32.mrf.mxu1 }
 0x1a6   : > { %v493_v56 = vadd.f32 %v484_v49, %v447_v53 }
 0x1a7   : > { %v490_v18 = vpop.f32.mrf.mxu0 }
 0x1a8   : > { %v539_v57 = vadd.f32 %v530_v50, %v493_v56 }
 0x1aa   : > { %v585_v61 = vadd.f32 %v576_v54, %v539_v57 }
 0x1ab   : > { %v441_v62 = vpop.f32.mrf.mxu3 }
 0x1ac   : > { %v1210_v0 = vadd.f32 %v594_v58, %v585_v61  ;;  %v448_v1 = vadd.f32 %v441_v62, %v402_v60  ;;  %v579_v2 = vpop.f32.mrf.mxu2 }
 0x1ae   : > { %v610_v4 = vsel %vm609_vm5, %v1210_v0, 0.0  ;;  %v618_v5 = vmul.f32 %v1210_v0, %v1210_v0  ;;  %v494_v6 = vadd.f32 %v487_v59, %v448_v1 }
 0x1af   : > { %v611_v7 = vrot.slane %v610_v4, 4 }
 0x1b0   : > { %v619_v8 = vsel %vm609_vm5, %v618_v5, 0.0  ;;  %v540_v9 = vadd.f32 %v533_v63, %v494_v6 }
 0x1b1   : > { %v612_v10 = vadd.f32 %v611_v7, %v610_v4  ;;  %v620_v11 = vrot.slane %v619_v8, 4 }
 0x1b2   : > { %v586_v14 = vadd.f32 %v579_v2, %v540_v9 }
 0x1b3   : > { %v613_v15 = vrot.slane %v612_v10, 2  ;;  %v621_v16 = vadd.f32 %v620_v11, %v619_v8  ;;  %v444_v17 = vpop.f32.mrf.mxu3 }
 0x1b4   : > { %v1217_v19 = vadd.f32 %v599_v12, %v586_v14  ;;  %v449_v20 = vadd.f32 %v444_v17, %v403_v13  ;;  %v582_v30 = vpop.f32.mrf.mxu2 }
 0x1b5   : > { %v614_v21 = vadd.f32 %v613_v15, %v612_v10  ;;  %v622_v22 = vrot.slane %v621_v16, 2 }
 0x1b6   : > { %v676_v24 = vsel %vm609_vm5, %v1217_v19, 0.0  ;;  %v684_v25 = vmul.f32 %v1217_v19, %v1217_v19  ;;  %v495_v26 = vadd.f32 %v490_v18, %v449_v20 }
 0x1b7   : > { %v615_v27 = vrot.slane %v614_v21, 1  ;;  %v623_v28 = vadd.f32 %v622_v22, %v621_v16  ;;  %v677_v29 = vrot.slane %v676_v24, 4 }
 0x1b8   : > { %v685_v31 = vsel %vm609_vm5, %v684_v25, 0.0  ;;  %v541_v32 = vadd.f32 %v536_v23, %v495_v26  ;;  %v642_v26 = vpop.permute.xlu2 %641 }
 0x1b9   : > { %v616_v33 = vadd.f32 %v615_v27, %v614_v21  ;;  %v624_v34 = vrot.slane %v623_v28, 1  ;;  %v678_v35 = vadd.f32 %v677_v29, %v676_v24  ;;  %v686_v36 = vrot.slane %v685_v31, 4 }
 0x1ba   : > { %v587_v38 = vadd.f32 %v582_v30, %v541_v32 }
 0x1bb   : > { %v617_v39 = vmul.f32 0.125, %v616_v33  ;;  %v625_v40 = vadd.f32 %v624_v34, %v623_v28  ;;  %v679_v41 = vrot.slane %v678_v35, 2  ;;  %v687_v42 = vadd.f32 %v686_v36, %v685_v31  ;;  %v708_v28 = vpop.permute.xlu1 %707  ;;  %v649_v31 = vpop.permute.xlu0 %648 }
 0x1bc   : > { %v1224_v43 = vadd.f32 %v604_v37, %v587_v38 }
 0x1bd   : > { %v680_v44 = vadd.f32 %v679_v41, %v678_v35  ;;  %v688_v45 = vrot.slane %v687_v42, 2  ;;  %v626_v46 = vmul.f32 0.125, %v625_v40  ;;  %v627_v47 = vmul.f32 %v617_v39, %v617_v39 }
 0x1be   : > { %v742_v48 = vsel %vm609_vm5, %v1224_v43, 0.0  ;;  %v750_v49 = vmul.f32 %v1224_v43, %v1224_v43 }
 0x1bf   : > { %v681_v50 = vrot.slane %v680_v44, 1  ;;  %v689_v51 = vadd.f32 %v688_v45, %v687_v42  ;;  %v743_v52 = vrot.slane %v742_v48, 4  ;;  %v628_v53 = vsub.f32 %v626_v46, %v627_v47 }
 0x1c0   : > { %v751_v54 = vsel %vm609_vm5, %v750_v49, 0.0  ;;  %v774_v47 = vpop.permute.xlu2 %773 }
 0x1c1   : > { %v682_v55 = vadd.f32 %v681_v50, %v680_v44  ;;  %v690_v56 = vrot.slane %v689_v51, 1  ;;  %v744_v57 = vadd.f32 %v743_v52, %v742_v48  ;;  %v752_v58 = vrot.slane %v751_v54, 4 }
 0x1c2   : > { %v629_v59 = vadd.f32 1e-05, %v628_v53 }
 0x1c3   : > { %v683_v60 = vmul.f32 0.125, %v682_v55  ;;  %v691_v61 = vadd.f32 %v690_v56, %v689_v51  ;;  %v745_v62 = vrot.slane %v744_v57, 2  ;;  %v753_v63 = vadd.f32 %v752_v58, %v751_v54 }
 0x1c4   : > { %1004 = vrsqrt.f32 %v629_v59  ;;  %vm636_vm7 = vweird.f32 %v629_v59 }
 0x1c5   : > { %v746_v1 = vadd.f32 %v745_v62, %v744_v57  ;;  %v754_v2 = vrot.slane %v753_v63, 2  ;;  %v692_v3 = vmul.f32 0.125, %v691_v61  ;;  %v693_v4 = vmul.f32 %v683_v60, %v683_v60 }
 0x1c7   : > { %v747_v5 = vrot.slane %v746_v1, 1  ;;  %v755_v6 = vadd.f32 %v754_v2, %v753_v63  ;;  %v694_v7 = vsub.f32 %v692_v3, %v693_v4 }
 0x1c8   : > { %v781_v58 = vpop.permute.xlu2 %780 }
 0x1c9   : > { %v748_v8 = vadd.f32 %v747_v5, %v746_v1  ;;  %v756_v9 = vrot.slane %v755_v6, 1  ;;  %v695_v10 = vadd.f32 1e-05, %v694_v7 }
 0x1ca   : > { %v1005_v11 = vpop.eup %1004 }
 0x1cb   : > { %v749_v12 = vmul.f32 0.125, %v748_v8  ;;  %v757_v13 = vadd.f32 %v756_v9, %v755_v6  ;;  %v631_v14 = vmul.f32 %v1005_v11, %v629_v59  ;;  %1006 = vrsqrt.f32 %v695_v10 }
 0x1cc   : > { %vm637_vm6 = vweird.f32 %v1005_v11  ;;  %vm702_vm10 = vweird.f32 %v695_v10 }
 0x1cd   : > { %v632_v15 = vmul.f32 %v1005_v11, %v631_v14  ;;  %v758_v16 = vmul.f32 0.125, %v757_v13  ;;  %v759_v17 = vmul.f32 %v749_v12, %v749_v12  ;;  %vm638_vm8 = vmor %vm636_vm7, %vm637_vm6 }
 0x1cf   : > { %v633_v18 = vmul.f32 0.5, %v632_v15  ;;  %v760_v20 = vsub.f32 %v758_v16, %v759_v17 }
 0x1d1   : > { %v634_v21 = vsub.f32 1.5, %v633_v18  ;;  %v761_v22 = vadd.f32 1e-05, %v760_v20  ;;  %v1007_v23 = vpop.eup %1006 }
 0x1d2   : > { %v697_v25 = vmul.f32 %v1007_v23, %v695_v10  ;;  %vm703_vm9 = vweird.f32 %v1007_v23 }
 0x1d3   : > { %v635_v24 = vmul.f32 %v1005_v11, %v634_v21  ;;  %1008 = vrsqrt.f32 %v761_v22  ;;  %vm704_vm11 = vmor %vm702_vm10, %vm703_vm9  ;;  %vm768_vm13 = vweird.f32 %v761_v22 }
 0x1d4   : > { %v698_v29 = vmul.f32 %v1007_v23, %v697_v25 }
 0x1d5   : > { %v639_v27 = vsel %vm638_vm8, %v1005_v11, %v635_v24 }
 0x1d6   : > { %v644_v30 = vmul.f32 %v642_v26, %v639_v27  ;;  %v699_v32 = vmul.f32 0.5, %v698_v29 }
 0x1d8   : > { %v646_v33 = vmul.f32 %v644_v30, %v617_v39  ;;  %v700_v35 = vsub.f32 1.5, %v699_v32  ;;  %v645_v36 = vmul.f32 %v644_v30, %v1210_v0  ;;  %v715_v39 = vpop.permute.xlu1 %714 }
 0x1d9   : > { %v1009_v34 = vpop.eup %1008 }
 0x1da   : > { %v651_v37 = vsub.f32 %v649_v31, %v646_v33  ;;  %v763_v38 = vmul.f32 %v1009_v34, %v761_v22  ;;  %v701_v40 = vmul.f32 %v1007_v23, %v700_v35  ;;  %vm769_vm12 = vweird.f32 %v1009_v34 }
 0x1db   : > { %vm770_vm14 = vmor %vm768_vm13, %vm769_vm12 }
 0x1dc   : > { %v1232_v41 = vadd.f32 %v651_v37, %v645_v36  ;;  %v764_v42 = vmul.f32 %v1009_v34, %v763_v38  ;;  %v705_v44 = vsel %vm704_vm11, %v1007_v23, %v701_v40 }
 0x1dd   : > { %v710_v46 = vmul.f32 %v708_v28, %v705_v44 }
 0x1de   : > { %v653_v45 = vmin.f32 %v1232_v41, 20.0  ;;  %v765_v48 = vmul.f32 0.5, %v764_v42 }
 0x1df   : > { %v712_v51 = vmul.f32 %v710_v46, %v683_v60  ;;  %v711_v0 = vmul.f32 %v710_v46, %v1217_v19 }
 0x1e0   : > { %v654_v49 = vmul.f32 1.442695, %v653_v45  ;;  %v766_v50 = vsub.f32 1.5, %v765_v48 }
 0x1e1   : > { %v717_v53 = vsub.f32 %v715_v39, %v712_v51 }
 0x1e2   : > { %1010 = vpow2.f32 %v654_v49  ;;  %v767_v52 = vmul.f32 %v1009_v34, %v766_v50 }
 0x1e3   : > { %v1236_v55 = vadd.f32 %v717_v53, %v711_v0 }
 0x1e4   : > { %v771_v54 = vsel %vm770_vm14, %v1009_v34, %v767_v52 }
 0x1e5   : > { %v776_v56 = vmul.f32 %v774_v47, %v771_v54  ;;  %v719_v57 = vmin.f32 %v1236_v55, 20.0 }
 0x1e7   : > { %v778_v59 = vmul.f32 %v776_v56, %v749_v12  ;;  %v720_v62 = vmul.f32 1.442695, %v719_v57  ;;  %v777_v60 = vmul.f32 %v776_v56, %v1224_v43 }
 0x1e8   : > { %v1011_v61 = vpop.eup %1010 }
 0x1e9   : > { %v656_v63 = vadd.f32 2.0, %v1011_v61  ;;  %v783_v1 = vsub.f32 %v781_v58, %v778_v59  ;;  %1012 = vpow2.f32 %v720_v62 }
 0x1eb   : > { %v657_v2 = vmul.f32 %v1011_v61, %v656_v63  ;;  %v1240_v19 = vadd.f32 %v783_v1, %v777_v60 }
 0x1ed   : > { %v658_v3 = vadd.f32 2.0, %v657_v2  ;;  %v785_v4 = vmin.f32 %v1240_v19, 20.0 }
 0x1ef   : > { %1014 = vrcp.f32 %v658_v3  ;;  %v1013_v5 = vpop.eup %1012  ;;  %v786_v6 = vmul.f32 1.442695, %v785_v4  ;;  %v670_v13 = vand.u32 2147483648, %v658_v3  ;;  %v668_v16 = vand.u32 2147483647, %v658_v3 }
 0x1f0   : > { %v722_v7 = vadd.f32 2.0, %v1013_v5  ;;  %vm664_vm0 = vweird.f32 %v658_v3 }
 0x1f1   : > { %1016 = vpow2.f32 %v786_v6  ;;  %v671_v21 = vor.u32 1.1754944e-38, %v670_v13  ;;  %vm669_vm2 = vcmp.eq.f32.partialorder %v668_v16, 8.507059e+37 }
 0x1f2   : > { %v723_v8 = vmul.f32 %v1013_v5, %v722_v7 }
 0x1f4   : > { %v724_v10 = vadd.f32 2.0, %v723_v8 }
 0x1f5   : > { %v1015_v9 = vpop.eup %1014 }
 0x1f6   : > { %v660_v11 = vmul.f32 %v1015_v9, %v658_v3  ;;  %1018 = vrcp.f32 %v724_v10  ;;  %vm665_vm15 = vweird.f32 %v1015_v9  ;;  %v736_v28 = vand.u32 2147483648, %v724_v10 }
 0x1f7   : > { %v1017_v43 = vpop.eup %1016  ;;  %vm666_vm1 = vmor %vm664_vm0, %vm665_vm15  ;;  %v734_v31 = vand.u32 2147483647, %v724_v10  ;;  %vm730_vm4 = vweird.f32 %v724_v10 }
 0x1f8   : > { %v661_v12 = vsub.f32 1.0, %v660_v11  ;;  %v788_v14 = vadd.f32 2.0, %v1017_v43  ;;  %v737_v34 = vor.u32 1.1754944e-38, %v736_v28 }
 0x1f9   : > { %vm735_vm7 = vcmp.eq.f32.partialorder %v734_v31, 8.507059e+37 }
 0x1fa   : > { %v662_v15 = vmul.f32 %v1015_v9, %v661_v12  ;;  %v789_v17 = vmul.f32 %v1017_v43, %v788_v14 }
 0x1fc   : > { %v663_v18 = vadd.f32 %v1015_v9, %v662_v15  ;;  %v1019_v20 = vpop.eup %1018  ;;  %v790_v22 = vadd.f32 2.0, %v789_v17 }
 0x1fd   : > { %v726_v24 = vmul.f32 %v1019_v20, %v724_v10  ;;  %vm731_vm3 = vweird.f32 %v1019_v20 }
 0x1fe   : > { %v667_v23 = vsel %vm666_vm1, %v1015_v9, %v663_v18  ;;  %1020 = vrcp.f32 %v790_v22  ;;  %vm732_vm6 = vmor %vm730_vm4, %vm731_vm3  ;;  %v802_v42 = vand.u32 2147483648, %v790_v22  ;;  %v800_v45 = vand.u32 2147483647, %v790_v22 }
 0x1ff   : > { %v672_v25 = vsel %vm669_vm2, %v671_v21, %v667_v23  ;;  %v727_v27 = vsub.f32 1.0, %v726_v24  ;;  %vm796_vm9 = vweird.f32 %v790_v22 }
 0x200   : > { %v673_v26 = vmul.f32 %v672_v25, %v657_v2  ;;  %v803_v47 = vor.u32 1.1754944e-38, %v802_v42  ;;  %vm801_vm11 = vcmp.eq.f32.partialorder %v800_v45, 8.507059e+37 }
 0x201   : > { %v728_v30 = vmul.f32 %v1019_v20, %v727_v27 }
 0x202   : > { %v674_v29 = vmul.f32 %v673_v26, %v1232_v41 }
 0x203   : > { %v729_v32 = vadd.f32 %v1019_v20, %v728_v30 }
 0x204   : > { %675 = vst.msk [vmem:[%s1247_s19] sm:$0xff] %vm609_vm5, %v674_v29  ;;  %v1021_v33 = vpop.eup %1020 }
 0x205   : > { %v733_v35 = vsel %vm732_vm6, %v1019_v20, %v729_v32  ;;  %v792_v36 = vmul.f32 %v1021_v33, %v790_v22  ;;  %vm797_vm8 = vweird.f32 %v1021_v33 }
 0x206   : > { %v738_v37 = vsel %vm735_vm7, %v737_v34, %v733_v35  ;;  %vm798_vm10 = vmor %vm796_vm9, %vm797_vm8 }
 0x207   : > { %v739_v38 = vmul.f32 %v738_v37, %v723_v8  ;;  %v793_v40 = vsub.f32 1.0, %v792_v36 }
 0x209   : > { %v740_v41 = vmul.f32 %v739_v38, %v1236_v55  ;;  %v794_v44 = vmul.f32 %v1021_v33, %v793_v40 }
 0x20b   : > { %741 = vst.msk [vmem:[%s1247_s19 + $0x8] sm:$0xff] %vm609_vm5, %v740_v41  ;;  %v795_v46 = vadd.f32 %v1021_v33, %v794_v44 }
 0x20d   : > { %v799_v48 = vsel %vm798_vm10, %v1021_v33, %v795_v46 }
 0x20e   : > { %v804_v39 = vsel %vm801_vm11, %v803_v47, %v799_v48 }
 0x20f   : > { %v805_v49 = vmul.f32 %v804_v39, %v789_v17 }
 0x211   : > { %v806_v50 = vmul.f32 %v805_v49, %v1240_v19 }
 0x213   : > { %807 = vst.msk [vmem:[%s1247_s19 + $0x10] sm:$0xff] %vm609_vm5, %v806_v50 }
 0x214 PF: > { %s14_s17 = sadd.s32 1, %s1044_s17   ;;  %s1272_s15 = smov %s1040_s16 }
 0x215   : > { %p11_p5 = scmp.ge.s32.totalorder %s14_s17, 4   ;;  %s1273_s16 = smov %s1275_s18 }
 0x217   :  { %13 = sbr.rel (!%p11_p5) target bundleno = 2 (0x2), region = 75 }

</bundles_post_ra>
